<compile_context>
chip_gen: v5e
topology: v5e:2x2
jax: 0.10.0
libtpu: 0.0.40
codegen_flags: <defaults>
</compile_context>

<pallas_src>
import functools

import jax
import jax.numpy as jnp
from jax import lax
from jax.experimental import pallas as pl
from jax.experimental.pallas import tpu as pltpu


# ---------------------------------------------------------------------------
# Kernel
# ---------------------------------------------------------------------------
def _llama_mlp_kernel(x_ref, wg_ref, wu_ref, wd_ref, o_ref, acc_ref, *,
                      precision):
    """Grid: (M // tm, I_pad // ti).  Axis 0 = token tiles ("parallel"),
    axis 1 = intermediate tiles (reduction, "arbitrary", innermost).

    x_ref:  (tm, H)   token tile, resident across the I axis
    wg_ref: (H, ti)   gate_proj^T weight slab (natural (K, N) layout)
    wu_ref: (H, ti)   up_proj^T   weight slab
    wd_ref: (ti, H)   down_proj^T weight slab
    o_ref:  (tm, H)   output tile
    acc_ref:(tm, H)   fp32 VMEM accumulator (persists across the I axis)
    """
    j = pl.program_id(1)

    @pl.when(j == 0)
    def _init():
        acc_ref[...] = jnp.zeros_like(acc_ref)

    x = x_ref[...]
    gate = jnp.dot(x, wg_ref[...], preferred_element_type=jnp.float32,
                   precision=precision)                        # (tm, ti) f32
    up = jnp.dot(x, wu_ref[...], preferred_element_type=jnp.float32,
                 precision=precision)                          # (tm, ti) f32
    # SiLU in fp32 on the MXU accumulators (sigmoid -> EUP exp/recip path).
    hidden = (gate * jax.nn.sigmoid(gate)) * up                # (tm, ti) f32

    acc_ref[...] += jnp.dot(hidden.astype(wd_ref.dtype), wd_ref[...],
                            preferred_element_type=jnp.float32,
                            precision=precision)               # (tm, H)  f32

    @pl.when(j == pl.num_programs(1) - 1)
    def _finalize():
        o_ref[...] = acc_ref[...].astype(o_ref.dtype)


# ---------------------------------------------------------------------------
# Tiling / VMEM heuristics (generation-aware)
# ---------------------------------------------------------------------------
def _round_up(v, m):
    return ((v + m - 1) // m) * m


def _vmem_capacity_bytes():
    """Physical VMEM per TensorCore; conservative (v7x-sized) fallback."""
    try:
        info = pltpu.get_tpu_info()
        cap = int(getattr(info, "vmem_capacity_bytes", 0) or 0)
        if cap > 0:
            return cap
    except Exception:
        pass
    return 64 << 20


def _footprint_bytes(tm, ti, hidden, act_bytes, w_bytes):
    b = 0
    b += 2 * tm * hidden * act_bytes      # x tile (double-buffered)
    b += 2 * 2 * hidden * ti * w_bytes    # gate^T + up^T slabs (double-buffered)
    b += 2 * ti * hidden * w_bytes        # down^T slab (double-buffered)
    b += 2 * tm * hidden * act_bytes      # output tile (double-buffered)
    b += tm * hidden * 4                  # fp32 accumulator scratch
    b += 3 * tm * ti * 4                  # gate / up / hidden fp32 temporaries
    return b


def _pick_tiles(M, hidden, intermediate, act_bytes, w_bytes, cap,
                tile_m, tile_i):
    budget = int(cap * 0.80)

    # Token tile: arithmetic intensity is ~2*tm/w_bytes FLOP per weight byte
    # (weights re-streamed once per token tile), so tm must sit past the
    # compute/BW crossover (~720 FLOP/B on v6e, ~310/TC on v7x) to stay
    # MXU-bound.  Big-VMEM chips (v5e/v6e, 128 MiB) get tm=1024; v7x -> 512.
    if tile_m is not None:
        tm = min(int(tile_m), M)
        if tm < M and tm % 8:
            raise ValueError("tile_m must be a multiple of 8 (or >= tokens)")
    else:
        tm_target = 1024 if cap >= (100 << 20) else 512
        tm = M if M <= tm_target else tm_target

    # Intermediate tile: multiple of 128 (lane-dense gate/up slabs).  The
    # weights are zero-padded to a ti multiple in HBM, so any I is supported.
    if tile_i is not None:
        ti = min(int(tile_i), intermediate)
        if ti < intermediate and ti % 128:
            raise ValueError("tile_i must be a multiple of 128 "
                             "(or >= intermediate_size)")
    else:
        ti = intermediate if intermediate <= 512 else 512

    # Shrink to the VMEM budget: ti first (does not change arithmetic
    # intensity), then tm.
    while _footprint_bytes(tm, ti, hidden, act_bytes, w_bytes) > budget:
        if tile_i is None and ti >= 256 and ti % 256 == 0:
            ti //= 2
        elif tile_m is None and tm >= 32 and tm % 16 == 0:
            tm //= 2
        else:
            break
    return tm, ti


def _vmem_limit_bytes(tm, ti, hidden, act_bytes, w_bytes, cap):
    b = _footprint_bytes(tm, ti, hidden, act_bytes, w_bytes)
    limit = int(b * 1.2) + (4 << 20)      # headroom for compiler temporaries
    limit = max(limit, 32 << 20)
    return min(limit, int(cap * 0.9))     # never above physical VMEM


# ---------------------------------------------------------------------------
# Wrapper
# ---------------------------------------------------------------------------
@functools.partial(jax.jit, static_argnames=("tile_m", "tile_i", "precision"))
def llama_mlp(x, w_gate, w_up, w_down, *, tile_m=None, tile_i=None,
              precision=None):
    """Fused LlamaMLP forward (pretraining_tp == 1 semantics).

    x:      (batch, seq, hidden)
    w_gate: (intermediate, hidden)   -- PyTorch nn.Linear (out, in) layout
    w_up:   (intermediate, hidden)
    w_down: (hidden, intermediate)
    precision: lax.Precision for the matmuls (None == DEFAULT: exact for
               bf16, fast single-pass for f32).
    returns (batch, seq, hidden)
    """
    batch, seq, hidden = x.shape
    intermediate = w_gate.shape[0]
    M = batch * seq
    x2d = x.reshape(M, hidden)

    act_bytes = x.dtype.itemsize
    w_bytes = w_gate.dtype.itemsize
    cap = _vmem_capacity_bytes()
    tm, ti = _pick_tiles(M, hidden, intermediate, act_bytes, w_bytes, cap,
                         tile_m, tile_i)

    # Natural (M,K)x(K,N) contractions inside the kernel: transpose the
    # (out,in) PyTorch weights once at the wrapper boundary (no per-tile XLU
    # transpose/relayout contending with the MXU issue slot) and zero-pad the
    # intermediate axis to a ti multiple (padded columns contribute exact
    # zeros: silu(0)*0).  Production callers should cache weights in this
    # layout/padding instead of paying the copy per call.
    wg_t = w_gate.T                       # (H, I)
    wu_t = w_up.T                         # (H, I)
    wd_t = w_down.T                       # (I, H)
    i_pad = _round_up(intermediate, ti)
    if i_pad != intermediate:
        pad = i_pad - intermediate
        wg_t = jnp.pad(wg_t, ((0, 0), (0, pad)))
        wu_t = jnp.pad(wu_t, ((0, 0), (0, pad)))
        wd_t = jnp.pad(wd_t, ((0, pad), (0, 0)))

    grid = (pl.cdiv(M, tm), i_pad // ti)

    cost = pl.CostEstimate(
        flops=6 * M * hidden * intermediate,          # 3 matmuls x 2 FLOP/MAC
        transcendentals=M * intermediate,
        # Weights are re-streamed once per token tile (grid[0] times).
        bytes_accessed=(2 * M * hidden * act_bytes
                        + grid[0] * 3 * hidden * i_pad * w_bytes),
    )

    kernel = functools.partial(_llama_mlp_kernel, precision=precision)

    # TODO(synk): v7x decode/small-M (single token tile) leaves one TensorCore
    # idle; a reduction-split-across-cores path (partial acc per core + final
    # sum) would roughly double decode throughput.
    out2d = pl.pallas_call(
        kernel,
        out_shape=jax.ShapeDtypeStruct((M, hidden), x.dtype),
        grid_spec=pltpu.PrefetchScalarGridSpec(
            num_scalar_prefetch=0,
            grid=grid,
            in_specs=[
                pl.BlockSpec((tm, hidden), lambda i, j: (i, 0)),  # x (resident over j)
                pl.BlockSpec((hidden, ti), lambda i, j: (0, j)),  # gate_proj^T slab
                pl.BlockSpec((hidden, ti), lambda i, j: (0, j)),  # up_proj^T slab
                pl.BlockSpec((ti, hidden), lambda i, j: (j, 0)),  # down_proj^T slab
            ],
            out_specs=pl.BlockSpec((tm, hidden), lambda i, j: (i, 0)),
            scratch_shapes=[pltpu.VMEM((tm, hidden), jnp.float32)],
        ),
        compiler_params=pltpu.CompilerParams(
            dimension_semantics=("parallel", "arbitrary"),
            vmem_limit_bytes=_vmem_limit_bytes(tm, ti, hidden, act_bytes,
                                               w_bytes, cap),
        ),
        cost_estimate=cost,
    )(x2d, wg_t, wu_t, wd_t)

    return out2d.reshape(batch, seq, hidden)


# ---------------------------------------------------------------------------
# Reference + self-test
# ---------------------------------------------------------------------------
def llama_mlp_ref(x, w_gate, w_up, w_down, precision=None):
    """Pure-JAX reference identical to the PyTorch forward (tp == 1)."""
    g = jnp.einsum("bsh,ih->bsi", x, w_gate, precision=precision)
    u = jnp.einsum("bsh,ih->bsi", x, w_up, precision=precision)
    h = jax.nn.silu(g) * u
    return jnp.einsum("bsi,hi->bsh", h, w_down, precision=precision)


def _run_case(key, batch, seq, hidden, intermediate, *, precision=None,
              atol=2e-2, rtol=2e-2, **tile_kw):
    kx, kg, ku, kd = jax.random.split(key, 4)
    x = jax.random.normal(kx, (batch, seq, hidden), dtype=jnp.float32)
    # PyTorch nn.Linear weight layout: (out_features, in_features); no bias.
    w_gate = jax.random.normal(kg, (intermediate, hidden), jnp.float32) * 0.05
    w_up = jax.random.normal(ku, (intermediate, hidden), jnp.float32) * 0.05
    w_down = jax.random.normal(kd, (hidden, intermediate), jnp.float32) * 0.05

    out = jax.block_until_ready(
        llama_mlp(x, w_gate, w_up, w_down, precision=precision, **tile_kw))
    ref = llama_mlp_ref(x, w_gate, w_up, w_down, precision=precision)
    assert out.shape == (batch, seq, hidden)
    assert bool(jnp.allclose(out, ref, atol=atol, rtol=rtol)), (
        f"mismatch vs reference (max abs err "
        f"{float(jnp.max(jnp.abs(out - ref))):.3e})")


if __name__ == "__main__":
    key = jax.random.PRNGKey(0)
    k1, k2, k3 = jax.random.split(key, 3)

    # 1) Small module-consistent shapes (batch=2, seq=8, hidden=32, I=64),
    #    single grid step, near-exact precision check.
    _run_case(k1, batch=2, seq=8, hidden=32, intermediate=64,
              precision=lax.Precision.HIGHEST, atol=1e-4, rtol=1e-3)

    # 2) Tiled/accumulating path with a ragged token tile AND a zero-padded
    #    intermediate axis (I=448, ti=128 -> padded to 512): grid = (2, 4).
    _run_case(k2, batch=2, seq=96, hidden=128, intermediate=448,
              precision=lax.Precision.HIGHEST, atol=1e-4, rtol=1e-3,
              tile_m=128, tile_i=128)

    # 3) Production-path (DEFAULT precision) on the same tiled shapes.
    _run_case(k3, batch=2, seq=96, hidden=128, intermediate=448,
              precision=None, atol=3e-2, rtol=3e-2,
              tile_m=128, tile_i=128)

    print("KERNEL_OK")
</pallas_src>

<mosaic_0001>
module attributes {stable_mosaic.version = 11 : i64} {
  func.func @_llama_mlp_kernel(%arg0: i32, %arg1: i32, %arg2: memref<16x32xf32, #tpu.memory_space<vmem>>, %arg3: memref<32x64xf32, #tpu.memory_space<vmem>>, %arg4: memref<32x64xf32, #tpu.memory_space<vmem>>, %arg5: memref<64x32xf32, #tpu.memory_space<vmem>>, %arg6: memref<16x32xf32, #tpu.memory_space<vmem>>, %arg7: memref<16x32xf32, #tpu.memory_space<vmem>>) attributes {dimension_semantics = [#tpu.dimension_semantics<parallel>, #tpu.dimension_semantics<arbitrary>], iteration_bounds = array<i64: 1, 1>, scalar_prefetch = 0 : i64, scratch_operands = 1 : i64, tpu.core_type = #tpu.core_type<tc>, window_params = [{transform_indices = @transform_0, window_bounds = array<i64: 16, 32>}, {transform_indices = @transform_1, window_bounds = array<i64: 32, 64>}, {transform_indices = @transform_2, window_bounds = array<i64: 32, 64>}, {transform_indices = @transform_3, window_bounds = array<i64: 64, 32>}, {transform_indices = @transform_4, window_bounds = array<i64: 16, 32>}]} {
    %c0_i32 = arith.constant 0 : i32
    %0 = arith.cmpi eq, %arg1, %c0_i32 : i32
    %1 = arith.extui %0 : i1 to i32
    %c0_i32_0 = arith.constant 0 : i32
    %2 = arith.cmpi ne, %1, %c0_i32_0 : i32
    scf.if %2 {
      %cst_17 = arith.constant 0.000000e+00 : f32
      %23 = vector.broadcast %cst_17 : f32 to vector<16x32xf32>
      %c0_18 = arith.constant 0 : index
      %c0_19 = arith.constant 0 : index
      %24 = vector.load %arg7[%c0_18, %c0_19] : memref<16x32xf32, #tpu.memory_space<vmem>>, vector<16x32xf32>
      tpu.vector_store %arg7[%c0_18, %c0_19], %23 {strides = array<i32>} : memref<16x32xf32, #tpu.memory_space<vmem>>, vector<16x32xf32>,
    } else {
    }
    %c0 = arith.constant 0 : index
    %c0_1 = arith.constant 0 : index
    %3 = vector.load %arg2[%c0, %c0_1] : memref<16x32xf32, #tpu.memory_space<vmem>>, vector<16x32xf32>
    %c0_2 = arith.constant 0 : index
    %c0_3 = arith.constant 0 : index
    %4 = vector.load %arg3[%c0_2, %c0_3] : memref<32x64xf32, #tpu.memory_space<vmem>>, vector<32x64xf32>
    %cst = arith.constant dense<0.000000e+00> : vector<16x64xf32>
    %5 = tpu.matmul %3, %4, %cst {dimension_numbers = #tpu.dot_dimension_numbers<[1], [0], [0], [1], [0, 0, 1, 1], [], []>, precision = #tpu.contract_precision<fp32>} : vector<16x32xf32>, vector<32x64xf32>, vector<16x64xf32> -> vector<16x64xf32>
    %c0_4 = arith.constant 0 : index
    %c0_5 = arith.constant 0 : index
    %6 = vector.load %arg4[%c0_4, %c0_5] : memref<32x64xf32, #tpu.memory_space<vmem>>, vector<32x64xf32>
    %cst_6 = arith.constant dense<0.000000e+00> : vector<16x64xf32>
    %7 = tpu.matmul %3, %6, %cst_6 {dimension_numbers = #tpu.dot_dimension_numbers<[1], [0], [0], [1], [0, 0, 1, 1], [], []>, precision = #tpu.contract_precision<fp32>} : vector<16x32xf32>, vector<32x64xf32>, vector<16x64xf32> -> vector<16x64xf32>
    %8 = arith.negf %5 : vector<16x64xf32>
    %9 = math.exp %8 : vector<16x64xf32>
    %cst_7 = arith.constant 1.000000e+00 : f32
    %10 = vector.broadcast %cst_7 : f32 to vector<16x64xf32>
    %11 = arith.addf %10, %9 : vector<16x64xf32>
    %12 = arith.divf %10, %11 : vector<16x64xf32>
    %13 = arith.mulf %5, %12 : vector<16x64xf32>
    %14 = arith.mulf %13, %7 : vector<16x64xf32>
    %c0_8 = arith.constant 0 : index
    %c0_9 = arith.constant 0 : index
    %15 = vector.load %arg7[%c0_8, %c0_9] : memref<16x32xf32, #tpu.memory_space<vmem>>, vector<16x32xf32>
    %c0_10 = arith.constant 0 : index
    %c0_11 = arith.constant 0 : index
    %16 = vector.load %arg5[%c0_10, %c0_11] : memref<64x32xf32, #tpu.memory_space<vmem>>, vector<64x32xf32>
    %cst_12 = arith.constant dense<0.000000e+00> : vector<16x32xf32>
    %17 = tpu.matmul %14, %16, %cst_12 {dimension_numbers = #tpu.dot_dimension_numbers<[1], [0], [0], [1], [0, 0, 1, 1], [], []>, precision = #tpu.contract_precision<fp32>} : vector<16x64xf32>, vector<64x32xf32>, vector<16x32xf32> -> vector<16x32xf32>
    %18 = arith.addf %15, %17 : vector<16x32xf32>
    %c0_13 = arith.constant 0 : index
    %c0_14 = arith.constant 0 : index
    %19 = vector.load %arg7[%c0_13, %c0_14] : memref<16x32xf32, #tpu.memory_space<vmem>>, vector<16x32xf32>
    tpu.vector_store %arg7[%c0_13, %c0_14], %18 {strides = array<i32>} : memref<16x32xf32, #tpu.memory_space<vmem>>, vector<16x32xf32>,
    %c0_i32_15 = arith.constant 0 : i32
    %20 = arith.cmpi eq, %arg1, %c0_i32_15 : i32
    %21 = arith.extui %20 : i1 to i32
    %c0_i32_16 = arith.constant 0 : i32
    %22 = arith.cmpi ne, %21, %c0_i32_16 : i32
    scf.if %22 {
      %c0_17 = arith.constant 0 : index
      %c0_18 = arith.constant 0 : index
      %23 = vector.load %arg7[%c0_17, %c0_18] : memref<16x32xf32, #tpu.memory_space<vmem>>, vector<16x32xf32>
      %c0_19 = arith.constant 0 : index
      %c0_20 = arith.constant 0 : index
      %24 = vector.load %arg6[%c0_19, %c0_20] : memref<16x32xf32, #tpu.memory_space<vmem>>, vector<16x32xf32>
      tpu.vector_store %arg6[%c0_19, %c0_20], %23 {strides = array<i32>} : memref<16x32xf32, #tpu.memory_space<vmem>>, vector<16x32xf32>,
    } else {
    }
    return
  }
  func.func @transform_0(%arg0: i32, %arg1: i32) -> (i32, i32) {
    %c0_i32 = arith.constant 0 : i32
    %c0_i32_0 = arith.constant 0 : i32
    return %arg0, %c0_i32 : i32, i32
  }
  func.func @transform_1(%arg0: i32, %arg1: i32) -> (i32, i32) {
    %c0_i32 = arith.constant 0 : i32
    %c0_i32_0 = arith.constant 0 : i32
    return %c0_i32, %arg1 : i32, i32
  }
  func.func @transform_2(%arg0: i32, %arg1: i32) -> (i32, i32) {
    %c0_i32 = arith.constant 0 : i32
    %c0_i32_0 = arith.constant 0 : i32
    return %c0_i32, %arg1 : i32, i32
  }
  func.func @transform_3(%arg0: i32, %arg1: i32) -> (i32, i32) {
    %c0_i32 = arith.constant 0 : i32
    %c0_i32_0 = arith.constant 0 : i32
    return %arg1, %c0_i32 : i32, i32
  }
  func.func @transform_4(%arg0: i32, %arg1: i32) -> (i32, i32) {
    %c0_i32 = arith.constant 0 : i32
    %c0_i32_0 = arith.constant 0 : i32
    return %arg0, %c0_i32 : i32, i32
  }
}

</mosaic_0001>

<bundles_post_ra>
// kernel: llama_mlp.1
= control target key start
LH: loop header
LB: loop body
LE: loop exit
PB: predicated region body
PF: predicated region fallthrough
CT: control target
= control target key end

     0   :  { %vm22_vm0 = vcmask 261120   ;;  %s1191_s0 = inlined_call_operand.vmem [shape: f32[16,32], index: 0, kind: input, shape index: {}]   ;;  %s1192_s1 = inlined_call_operand.vmem [shape: f32[32,64], index: 1, kind: input, shape index: {}]   ;;  %s1193_s2 = inlined_call_operand.vmem [shape: f32[32,64], index: 2, kind: input, shape index: {}]   ;;  %s1194_s3 = inlined_call_operand.vmem [shape: f32[64,32], index: 3, kind: input, shape index: {}]   ;;  %s1195_s4 = inlined_call_operand.hbm [shape: f32[16,32], index: 4, kind: output, shape index: {}]  }
   0x1   :  { %v30_v0 = vld [vmem:[%s1192_s1 + $0x18] sm:$0xff]  ;;  %v29_v1 = vld [vmem:[%s1192_s1 + $0x10] sm:$0xff]  ;;  %v28_v2 = vld [vmem:[%s1192_s1 + $0x8] sm:$0xff] }
   0x2   :  { %v916_v3 = vand.u32 4294901760, %v30_v0  ;;  %v918_v4 = vand.u32 4294901760, %v29_v1  ;;  %v920_v5 = vand.u32 4294901760, %v28_v2  ;;  %v27_v6 = vld [vmem:[%s1192_s1] sm:$0xff]  ;;  %v26_v7 = vld [vmem:[%s1191_s0 + $0x8] sm:$0xff]  ;;  %v257_v16 = vld [vmem:[%s1193_s2 + $0x18] sm:$0xff] }
   0x3   :  { %v25_v8 = vld [vmem:[%s1191_s0] sm:$0xff]  ;;  %v931_v9 = vand.u32 4294901760, %v27_v6  ;;  %v36_v10 = vsel %vm22_vm0, %v26_v7, 0 }
   0x4   :  { %v33_v11 = vsel %vm22_vm0, %v25_v8, 0  ;;  %832 = vmatpush.msra.mxu2 %v916_v3  ;;  %v88_v12 = vsub.f32 %v30_v0, %v916_v3  ;;  %v937_v13 = vand.u32 4294901760, %v36_v10  ;;  %v94_v14 = vsub.f32 %v29_v1, %v918_v4  ;;  %51 = vmatpush.msra.mxu0 %v916_v3 }
   0x5   :  { %v941_v15 = vsub.f32 %v28_v2, %v920_v5 }
   0x6   :  { %9 = vsyncpa [#allocation4], 0  ;;  %v948_v17 = vsub.f32 %v27_v6, %v931_v9  ;;  %v950_v18 = vand.u32 4294901760, %v33_v11  ;;  %833 = vmatpush.msra.mxu2 %v918_v4  ;;  %v89_v19 = vand.u32 4294901760, %v88_v12  ;;  %v954_v20 = vsub.f32 %v36_v10, %v937_v13  ;;  %53 = vmatpush.msra.mxu0 %v918_v4  ;;  %v256_v23 = vld [vmem:[%s1193_s2 + $0x10] sm:$0xff]  ;;  %v255_v33 = vld [vmem:[%s1193_s2 + $0x8] sm:$0xff] }
   0x7   :  { %v95_v21 = vand.u32 4294901760, %v94_v14  ;;  %v101_v22 = vand.u32 4294901760, %v941_v15  ;;  %v965_v26 = vand.u32 4294901760, %v257_v16  ;;  %v976_v32 = vand.u32 4294901760, %v256_v23  ;;  %v254_v39 = vld [vmem:[%s1193_s2] sm:$0xff]  ;;  %v525_v62 = vld [vmem:[%s1194_s3 + $0x38] sm:$0xff] }
   0x8   :  { %v107_v24 = vand.u32 4294901760, %v948_v17  ;;  %v963_v25 = vsub.f32 %v33_v11, %v950_v18  ;;  %834 = vmatpush.msra.mxu2 %v920_v5  ;;  %v90_v27 = vsub.f32 %v88_v12, %v89_v19  ;;  %v969_v28 = vand.u32 4294901760, %v954_v20  ;;  %55 = vmatpush.msra.mxu0 %v920_v5  ;;  %v524_v1 = vld [vmem:[%s1194_s3 + $0x30] sm:$0xff]  ;;  %s818_s25 = sshll.u32 %s1195_s4, 4  ;;  %s880_s26 = smov 128   ;;  %s819_s25 = int_to_ptr.hbm [resolvable:$true] %s818_s25 }
   0x9   :  { %v96_v29 = vsub.f32 %v94_v14, %v95_v21  ;;  %v102_v30 = vsub.f32 %v941_v15, %v101_v22  ;;  %v308_v42 = vsub.f32 %v257_v16, %v965_v26  ;;  %v996_v43 = vand.u32 4294901760, %v255_v33  ;;  %v521_v16 = vld [vmem:[%s1194_s3 + $0x18] sm:$0xff]  ;;  %s881_s0 = smov 8  }
   0xa   :  { %v974_v31 = vand.u32 4294901760, %v963_v25  ;;  %835 = vmatpush.msra.mxu2 %v931_v9  ;;  %v91_v34 = vand.u32 4294901760, %v90_v27  ;;  %v69_v35 = vsub.f32 %v954_v20, %v969_v28  ;;  %v108_v37 = vsub.f32 %v948_v17, %v107_v24  ;;  %57 = vmatpush.msra.mxu0 %v931_v9 }
   0xb   :  { %v97_v36 = vand.u32 4294901760, %v96_v29  ;;  %v103_v41 = vand.u32 4294901760, %v102_v30  ;;  %v314_v46 = vsub.f32 %v256_v23, %v976_v32  ;;  %v1002_v47 = vand.u32 4294901760, %v254_v39  ;;  %v519_v30 = vld [vmem:[%s1194_s3 + $0x8] sm:$0xff] }
   0xc   :  { %134 = vmatpush.msrb.mxu2 %v88_v12  ;;  %v61_v38 = vsub.f32 %v963_v25, %v974_v31  ;;  %203 = vmatpush.msrb.mxu0 %v89_v19  ;;  %v993_v40 = vand.u32 4294901760, %v69_v35  ;;  %v109_v45 = vand.u32 4294901760, %v108_v37  ;;  %v309_v48 = vand.u32 4294901760, %v308_v42 }
   0xd   :  { %836 = vmatpush.msra.mxu3 %v91_v34  ;;  %92 = vmatpush.msra.mxu1 %v91_v34  ;;  %v320_v49 = vsub.f32 %v255_v33, %v996_v43  ;;  %v315_v50 = vand.u32 4294901760, %v314_v46  ;;  %v326_v51 = vsub.f32 %v254_v39, %v1002_v47  ;;  %v1056_v63 = vand.u32 4294901760, %v525_v62 }
   0xe   :  { %137 = vmatpush.msrb.mxu2 %v94_v14  ;;  %v998_v44 = vand.u32 4294901760, %v61_v38  ;;  %207 = vmatpush.msrb.mxu0 %v95_v21  ;;  %v310_v52 = vsub.f32 %v308_v42, %v309_v48  ;;  %v1111_v23 = vand.u32 4294901760, %v521_v16  ;;  %v1135_v34 = vand.u32 4294901760, %v519_v30  ;;  %v518_v38 = vld [vmem:[%s1194_s3] sm:$0xff] }
   0xf   :  { %71 = vmatmul.f32.vlgmr.msra.gmra.mxu2 %v993_v40  ;;  %837 = vmatpush.msra.mxu3 %v97_v36  ;;  %v321_v53 = vand.u32 4294901760, %v320_v49  ;;  %v316_v54 = vsub.f32 %v314_v46, %v315_v50  ;;  %v327_v55 = vand.u32 4294901760, %v326_v51  ;;  %vm526_vm5 = vcmask 523264  }
  0x10   :  { %140 = vmatpush.msrb.mxu2 %v941_v15  ;;  %98 = vmatpush.msra.mxu1 %v97_v36  ;;  %v311_v56 = vand.u32 4294901760, %v310_v52 }
  0x11   :  { %838 = vmatpush.msra.mxu3 %v103_v41  ;;  %63 = vmatmul.f32.vlgmr.msra.gmra.mxu0 %v998_v44  ;;  %v322_v57 = vsub.f32 %v320_v49, %v321_v53  ;;  %v317_v58 = vand.u32 4294901760, %v316_v54  ;;  %v328_v59 = vsub.f32 %v326_v51, %v327_v55 }
  0x12   :  { %143 = vmatpush.msrb.mxu2 %v948_v17  ;;  %104 = vmatpush.msra.mxu1 %v103_v41 }
  0x13   :  { %839 = vmatpush.msra.mxu3 %v109_v45  ;;  %211 = vmatpush.msrb.mxu0 %v101_v22  ;;  %v323_v60 = vand.u32 4294901760, %v322_v57  ;;  %v329_v61 = vand.u32 4294901760, %v328_v59 }
  0x14   :  { %271 = vmatpush.msra.mxu2 %v965_v26  ;;  %116 = vmatmul.f32.vlgmr.msra.gmra.mxu3 %v937_v13 }
  0x15   :  { %110 = vmatpush.msra.mxu1 %v109_v45  ;;  %168 = vmatpush.msrb.mxu3 %v916_v3 }
  0x16   :  { %112 = vmatmul.f32.vlgmr.msra.gmra.mxu1 %v950_v18  ;;  %273 = vmatpush.msra.mxu2 %v976_v32 }
  0x17   :  { %238 = vmatpush.msrb.mxu1 %v916_v3  ;;  %146 = vmatmul.f32.vlgmr.msrb.gmra.mxu2 %v963_v25  ;;  %v1064_v3 = vsub.f32 %v525_v62, %v1056_v63 }
  0x18   :  { %170 = vmatpush.msrb.mxu3 %v918_v4  ;;  %215 = vmatpush.msrb.mxu0 %v107_v24  ;;  %v520_v24 = vld [vmem:[%s1194_s3 + $0x10] sm:$0xff] }
  0x19   :  { %240 = vmatpush.msrb.mxu1 %v918_v4  ;;  %275 = vmatpush.msra.mxu2 %v996_v43  ;;  %v1066_v4 = vand.u32 4294901760, %v524_v1  ;;  %v584_v6 = vand.u32 4294901760, %v1064_v3  ;;  %v1125_v29 = vand.u32 4294901760, %v520_v24 }
  0x1a   :  { %172 = vmatpush.msrb.mxu3 %v920_v5  ;;  %217 = vmatmul.f32.vlgmr.msrb.gmra.mxu0 %v950_v18 }
  0x1b   :  { %242 = vmatpush.msrb.mxu1 %v920_v5  ;;  %277 = vmatpush.msra.mxu2 %v1002_v47  ;;  %v523_v5 = vld [vmem:[%s1194_s3 + $0x28] sm:$0xff]  ;;  %v1075_v7 = vsub.f32 %v524_v1, %v1066_v4  ;;  %v585_v12 = vsub.f32 %v1064_v3, %v584_v6  ;;  %v613_v37 = vsub.f32 %v520_v24, %v1125_v29 }
  0x1c   :  { %174 = vmatpush.msrb.mxu3 %v931_v9  ;;  %354 = vmatpush.msra.mxu0 %v308_v42  ;;  %v1078_v8 = vand.u32 4294901760, %v523_v5  ;;  %v619_v42 = vsub.f32 %v519_v30, %v1135_v34 }
  0x1d   :  { %178 = vmatmul.f32.vlgmr.msrb.gmra.mxu3 %v974_v31  ;;  %244 = vmatpush.msrb.mxu1 %v931_v9  ;;  %v522_v9 = vld [vmem:[%s1194_s3 + $0x20] sm:$0xff]  ;;  %v586_v17 = vand.u32 4294901760, %v585_v12  ;;  %s879_s3 = smov [#allocation3]  }
  0x1e   :  { %312 = vmatpush.msra.mxu3 %v311_v56  ;;  %246 = vmatmul.f32.vlgmr.msrb.gmra.mxu1 %v950_v18  ;;  %v1092_v14 = vsub.f32 %v523_v5, %v1078_v8  ;;  %v1095_v15 = vand.u32 4294901760, %v522_v9  ;;  %s816_s22 = sshll.u32 %s879_s3, 4  ;;  %s817_s22 = int_to_ptr.vmem [resolvable:$true] %s816_s22 }
  0x1f   :  { %423 = vmatpush.msrb.mxu2 %v309_v48  ;;  %388 = vmatpush.msra.mxu1 %v965_v26 }
  0x20   :  { %151 = vmatmul.f32.gmra.mxu2 %v954_v20  ;;  %318 = vmatpush.msra.mxu3 %v317_v58  ;;  %v596_v19 = vand.u32 4294901760, %v1092_v14 }
  0x21   :  { %427 = vmatpush.msrb.mxu2 %v315_v50  ;;  %357 = vmatpush.msra.mxu0 %v314_v46  ;;  %v614_v46 = vand.u32 4294901760, %v613_v37 }
  0x22   :  { %324 = vmatpush.msra.mxu3 %v323_v60  ;;  %390 = vmatpush.msra.mxu1 %v976_v32 }
  0x23   :  { %221 = vmatmul.f32.gmra.mxu0 %v937_v13  ;;  %431 = vmatpush.msrb.mxu2 %v321_v53  ;;  %v615_v52 = vsub.f32 %v613_v37, %v614_v46 }
  0x24   :  { %330 = vmatpush.msra.mxu3 %v329_v61  ;;  %360 = vmatpush.msra.mxu0 %v320_v49 }
  0x25   :  { %184 = vmatmul.f32.gmra.mxu3 %v969_v28  ;;  %392 = vmatpush.msra.mxu1 %v996_v43  ;;  %v616_v57 = vand.u32 4294901760, %v615_v52 }
  0x26   :  { %458 = vmatpush.msrb.mxu3 %v965_v26  ;;  %250 = vmatmul.f32.gmra.mxu1 %v937_v13  ;;  %v597_v26 = vsub.f32 %v1092_v14, %v596_v19 }
  0x27   :  { %363 = vmatpush.msra.mxu0 %v326_v51  ;;  %394 = vmatpush.msra.mxu1 %v1002_v47 }
  0x28   :  { %283 = vmatmul.f32.vlgmr.msra.gmra.mxu2 %v998_v44  ;;  %460 = vmatpush.msrb.mxu3 %v976_v32  ;;  %v598_v32 = vand.u32 4294901760, %v597_v26 }
  0x29   :  { %435 = vmatpush.msrb.mxu2 %v327_v55  ;;  %542 = vmatpush.msrb.mxu0 %v1056_v63 }
  0x2a   :  { %462 = vmatpush.msrb.mxu3 %v996_v43  ;;  %587 = vmatpush.msrb.mxu1 %v586_v17  ;;  %v1145_v43 = vand.u32 4294901760, %v518_v38 }
  0x2b   :  { %366 = vmatmul.f32.vlgmr.msra.gmra.mxu0 %v963_v25  ;;  %649 = vmatpush.msra.mxu2 %v1064_v3 }
  0x2c   :  { %464 = vmatpush.msrb.mxu3 %v1002_v47  ;;  %544 = vmatpush.msrb.mxu0 %v1066_v4  ;;  %v620_v47 = vand.u32 4294901760, %v619_v42  ;;  %v625_v48 = vsub.f32 %v518_v38, %v1145_v43 }
  0x2d   :  { %332 = vmatmul.f32.vlgmr.msra.gmra.mxu3 %v950_v18  ;;  %652 = vmatpush.msra.mxu2 %v1075_v7 }
  0x2e   :  { %398 = vmatmul.f32.vlgmr.msra.gmra.mxu1 %v974_v31  ;;  %691 = vmatpush.msra.mxu3 %v1056_v63  ;;  %v621_v53 = vsub.f32 %v619_v42, %v620_v47  ;;  %v626_v54 = vand.u32 4294901760, %v625_v48 }
  0x2f   :  { %546 = vmatpush.msrb.mxu0 %v1078_v8  ;;  %655 = vmatpush.msra.mxu2 %v1092_v14 }
  0x30   :  { %291 = vmatmul.f32.gmra.mxu2 %v993_v40  ;;  %693 = vmatpush.msra.mxu3 %v1066_v4  ;;  %v622_v58 = vand.u32 4294901760, %v621_v53  ;;  %v627_v59 = vsub.f32 %v625_v48, %v626_v54 }
  0x31   :  { %548 = vmatpush.msrb.mxu0 %v1095_v15 }
  0x32   :  { %695 = vmatpush.msra.mxu3 %v1078_v8 }
  0x33   :  { %371 = vmatmul.f32.gmra.mxu0 %v954_v20  ;;  %v1107_v20 = vsub.f32 %v522_v9, %v1095_v15 }
  0x34   :  { %697 = vmatpush.msra.mxu3 %v1095_v15  ;;  %550 = vmatpush.msrb.mxu0 %v1111_v23 }
  0x35   :  { %336 = vmatmul.f32.gmra.mxu3 %v937_v13  ;;  %v602_v27 = vand.u32 4294901760, %v1107_v20  ;;  %658 = vmatpush.msra.mxu2 %v1107_v20 }
  0x36   :  { %404 = vmatmul.f32.gmra.mxu1 %v969_v28  ;;  %v1123_v28 = vsub.f32 %v521_v16, %v1111_v23  ;;  %699 = vmatpush.msra.mxu3 %v1111_v23 }
  0x37   :  { %v603_v33 = vsub.f32 %v1107_v20, %v602_v27  ;;  %552 = vmatpush.msrb.mxu0 %v1125_v29 }
  0x38   :  { %437 = vmatmul.f32.vlgmr.msrb.gmra.mxu2 %v950_v18  ;;  %v608_v36 = vand.u32 4294901760, %v1123_v28  ;;  %701 = vmatpush.msra.mxu3 %v1125_v29 }
  0x39   :  { %661 = vmatpush.msra.mxu2 %v1123_v28  ;;  %v604_v41 = vand.u32 4294901760, %v603_v33  ;;  %554 = vmatpush.msrb.mxu0 %v1135_v34 }
  0x3a   :  { %v609_v45 = vsub.f32 %v1123_v28, %v608_v36  ;;  %703 = vmatpush.msra.mxu3 %v1135_v34 }
  0x3b   :  { %664 = vmatpush.msra.mxu2 %v613_v37  ;;  %556 = vmatpush.msrb.mxu0 %v1145_v43 }
  0x3c   :  { %v610_v51 = vand.u32 4294901760, %v609_v45  ;;  %705 = vmatpush.msra.mxu3 %v1145_v43 }
  0x3d   :  { %466 = vmatmul.f32.vlgmr.msrb.gmra.mxu3 %v950_v18  ;;  %667 = vmatpush.msra.mxu2 %v619_v42 }
  0x3e   :  { %730 = vmatpush.msra.mxu0 %v584_v6 }
  0x3f   :  { %670 = vmatpush.msra.mxu2 %v625_v48 }
  0x40   :  { %441 = vmatmul.f32.gmra.mxu2 %v937_v13 }
  0x45   :  { %470 = vmatmul.f32.gmra.mxu3 %v937_v13  ;;  %v590_v13 = vand.u32 4294901760, %v1075_v7 }
  0x47   :  { %v591_v18 = vsub.f32 %v1075_v7, %v590_v13  ;;  %734 = vmatpush.msra.mxu0 %v590_v13 }
  0x49   :  { %v592_v25 = vand.u32 4294901760, %v591_v18  ;;  %738 = vmatpush.msra.mxu0 %v596_v19 }
  0x4b   :  { %593 = vmatpush.msrb.mxu1 %v592_v25  ;;  %742 = vmatpush.msra.mxu0 %v602_v27 }
  0x4d   :  { %599 = vmatpush.msrb.mxu1 %v598_v32  ;;  %746 = vmatpush.msra.mxu0 %v608_v36 }
  0x4f   :  { %605 = vmatpush.msrb.mxu1 %v604_v41  ;;  %750 = vmatpush.msra.mxu0 %v614_v46 }
  0x51   :  { %611 = vmatpush.msrb.mxu1 %v610_v51  ;;  %754 = vmatpush.msra.mxu0 %v620_v47 }
  0x53   :  { %617 = vmatpush.msrb.mxu1 %v616_v57  ;;  %758 = vmatpush.msra.mxu0 %v626_v54 }
  0x55   :  { %623 = vmatpush.msrb.mxu1 %v622_v58 }
  0x8e   :  { %v64_v2 = vpop.f32.mrf.mxu0 }
  0x92   :  { %v1058_v0 = vpop.f32.mrf.mxu2 }
  0x93   :  { %v113_v11 = vpop.f32.mrf.mxu1 }
  0x94   :  { %v114_v21 = vadd.f32 %v113_v11, %v64_v2  ;;  %v628_v2 = vand.u32 4294901760, %v627_v59 }
  0x96   :  { %629 = vmatpush.msrb.mxu1 %v628_v2 }
  0x97   :  { %v1085_v10 = vpop.f32.mrf.mxu3  ;;  %v218_v31 = vpop.f32.mrf.mxu0 }
  0x98   :  { %v118_v55 = vadd.f32 %v1085_v10, %v1058_v0  ;;  %777 = vmatpush.msra.mxu1 %v1056_v63 }
  0x9a   :  { %v147_v22 = vpop.f32.mrf.mxu2  ;;  %779 = vmatpush.msra.mxu1 %v1066_v4 }
  0x9b   :  { %v148_v35 = vadd.f32 %v147_v22, %v114_v21  ;;  %v247_v40 = vpop.f32.mrf.mxu1 }
  0x9c   :  { %781 = vmatpush.msra.mxu1 %v1078_v8 }
  0x9e   :  { %783 = vmatpush.msra.mxu1 %v1095_v15 }
  0xa0   :  { %v179_v39 = vpop.f32.mrf.mxu3  ;;  %v222_v1 = vpop.f32.mrf.mxu0  ;;  %785 = vmatpush.msra.mxu1 %v1111_v23 }
  0xa1   :  { %v180_v44 = vadd.f32 %v179_v39, %v148_v35 }
  0xa2   :  { %787 = vmatpush.msra.mxu1 %v1125_v29 }
  0xa3   :  { %v152_v49 = vpop.f32.mrf.mxu2  ;;  %v219_v50 = vadd.f32 %v218_v31, %v180_v44  ;;  %v251_v5 = vpop.f32.mrf.mxu1 }
  0xa4   :  { %v153_v60 = vadd.f32 %v152_v49, %v118_v55  ;;  %789 = vmatpush.msra.mxu1 %v1135_v34 }
  0xa5   :  { %v1156_v56 = vadd.f32 %v247_v40, %v219_v50 }
  0xa6   :  { %791 = vmatpush.msra.mxu1 %v1145_v43 }
  0xa7   :  { %v830_v61 = vmul.f32 -1.442695, %v1156_v56 }
  0xa8   :  { %v185_v62 = vpop.f32.mrf.mxu3  ;;  %v367_v13 = vpop.f32.mrf.mxu0 }
  0xa9   :  { %844 = vpow2.f32 %v830_v61  ;;  %v186_v0 = vadd.f32 %v185_v62, %v153_v60 }
  0xab   :  { %v223_v9 = vadd.f32 %v222_v1, %v186_v0  ;;  %v284_v3 = vpop.f32.mrf.mxu2  ;;  %v399_v19 = vpop.f32.mrf.mxu1 }
  0xad   :  { %v1168_v6 = vadd.f32 %v251_v5, %v223_v9 }
  0xaf   :  { %v845_v7 = vpop.eup %844  ;;  %v831_v10 = vmul.f32 -1.442695, %v1168_v6 }
  0xb0   :  { %v480_v11 = vadd.f32 1.0, %v845_v7  ;;  %v333_v12 = vpop.f32.mrf.mxu3  ;;  %v372_v30 = vpop.f32.mrf.mxu0 }
  0xb1   :  { %846 = vpow2.f32 %v831_v10  ;;  %v334_v14 = vadd.f32 %v333_v12, %v284_v3  ;;  %v878_v3 = vmov 0.0  }
  0xb2   :  { %848 = vrcp.f32 %v480_v11  ;;  %v493_v21 = vand.u32 2147483648, %v480_v11  ;;  %v491_v24 = vand.u32 2147483647, %v480_v11  ;;  %vm487_vm2 = vweird.f32 %v480_v11  ;;  %23 = vst.msk [vmem:[#allocation2] sm:$0xff] %vm22_vm0, %v878_v3 }
  0xb3   :  { %v292_v63 = vpop.f32.mrf.mxu2  ;;  %v368_v20 = vadd.f32 %v367_v13, %v334_v14  ;;  %v405_v41 = vpop.f32.mrf.mxu1  ;;  %24 = vst.msk [vmem:[#allocation2 + $0x8] sm:$0xff] %vm22_vm0, %v878_v3 }
  0xb4   :  { %v494_v29 = vor.u32 1.1754944e-38, %v493_v21  ;;  %vm492_vm4 = vcmp.eq.f32.partialorder %v491_v24, 8.507059e+37 }
  0xb5   :  { %v400_v26 = vadd.f32 %v399_v19, %v368_v20 }
  0xb7   :  { %v847_v4 = vpop.eup %846 }
  0xb8   :  { %v849_v16 = vpop.eup %848  ;;  %v481_v17 = vadd.f32 1.0, %v847_v4  ;;  %v337_v18 = vpop.f32.mrf.mxu3 }
  0xb9   :  { %v483_v8 = vmul.f32 %v849_v16, %v480_v11  ;;  %vm488_vm1 = vweird.f32 %v849_v16  ;;  %v338_v27 = vadd.f32 %v337_v18, %v292_v63 }
  0xba   :  { %850 = vrcp.f32 %v481_v17  ;;  %vm489_vm3 = vmor %vm487_vm2, %vm488_vm1  ;;  %v508_v40 = vand.u32 2147483648, %v481_v17  ;;  %v506_v43 = vand.u32 2147483647, %v481_v17  ;;  %vm502_vm7 = vweird.f32 %v481_v17 }
  0xbb   :  { %v484_v15 = vsub.f32 1.0, %v483_v8  ;;  %v438_v22 = vpop.f32.mrf.mxu2  ;;  %v373_v38 = vadd.f32 %v372_v30, %v338_v27 }
  0xbc   :  { %v439_v34 = vadd.f32 %v438_v22, %v400_v26  ;;  %v509_v49 = vor.u32 1.1754944e-38, %v508_v40  ;;  %vm507_vm9 = vcmp.eq.f32.partialorder %v506_v43, 8.507059e+37 }
  0xbd   :  { %v485_v23 = vmul.f32 %v849_v16, %v484_v15  ;;  %v406_v47 = vadd.f32 %v405_v41, %v373_v38  ;;  %v516_v15 = vld [vmem:[#allocation2] sm:$0xff] }
  0xbf   :  { %v486_v25 = vadd.f32 %v849_v16, %v485_v23 }
  0xc0   :  { %v851_v28 = vpop.eup %850  ;;  %v467_v31 = vpop.f32.mrf.mxu3 }
  0xc1   :  { %v490_v32 = vsel %vm489_vm3, %v849_v16, %v486_v25  ;;  %v498_v33 = vmul.f32 %v851_v28, %v481_v17  ;;  %v468_v39 = vadd.f32 %v467_v31, %v439_v34  ;;  %vm503_vm6 = vweird.f32 %v851_v28 }
  0xc2   :  { %v495_v35 = vsel %vm492_vm4, %v494_v29, %v490_v32  ;;  %vm504_vm8 = vmor %vm502_vm7, %vm503_vm6 }
  0xc3   :  { %v512_v36 = vmul.f32 %v495_v35, %v1156_v56  ;;  %v499_v37 = vsub.f32 1.0, %v498_v33  ;;  %v442_v45 = vpop.f32.mrf.mxu2 }
  0xc4   :  { %v443_v53 = vadd.f32 %v442_v45, %v406_v47 }
  0xc5   :  { %v500_v42 = vmul.f32 %v851_v28, %v499_v37  ;;  %v514_v44 = vmul.f32 %v512_v36, %v468_v39 }
  0xc7   :  { %v501_v46 = vadd.f32 %v851_v28, %v500_v42  ;;  %v528_v48 = vsel %vm526_vm5, %v514_v44, 0 }
  0xc8   :  { %v557_v50 = vand.u32 4294901760, %v528_v48  ;;  %v471_v51 = vpop.f32.mrf.mxu3 }
  0xc9   :  { %v505_v52 = vsel %vm504_vm8, %v851_v28, %v501_v46  ;;  %v472_v57 = vadd.f32 %v471_v51, %v443_v53  ;;  %v517_v28 = vld [vmem:[#allocation2 + $0x8] sm:$0xff] }
  0xca   :  { %v510_v54 = vsel %vm507_vm9, %v509_v49, %v505_v52  ;;  %v558_v55 = vsub.f32 %v528_v48, %v557_v50  ;;  %631 = vmatmul.f32.vlgmr.msrb.gmra.mxu1 %v557_v50 }
  0xcb   :  { %v513_v56 = vmul.f32 %v510_v54, %v1168_v6 }
  0xcc   :  { %673 = vmatmul.f32.vlgmr.msra.gmra.mxu2 %v558_v55  ;;  %v559_v58 = vand.u32 4294901760, %v558_v55 }
  0xcd   :  { %v515_v59 = vmul.f32 %v513_v56, %v472_v57 }
  0xce   :  { %709 = vmatmul.f32.vlgmr.msra.gmra.mxu3 %v559_v58  ;;  %v560_v60 = vsub.f32 %v558_v55, %v559_v58 }
  0xcf   :  { %v531_v61 = vsel %vm526_vm5, %v515_v59, 0 }
  0xd0   :  { %v565_v62 = vand.u32 4294901760, %v531_v61  ;;  %v561_v1 = vand.u32 4294901760, %v560_v60 }
  0xd2   :  { %562 = vmatmul.f32.vlgmr.msrb.gmra.mxu0 %v561_v1  ;;  %635 = vmatmul.f32.gmra.mxu1 %v565_v62  ;;  %v566_v2 = vsub.f32 %v531_v61, %v565_v62 }
  0xd4   :  { %678 = vmatmul.f32.gmra.mxu2 %v566_v2  ;;  %v567_v0 = vand.u32 4294901760, %v566_v2 }
  0xd6   :  { %715 = vmatmul.f32.gmra.mxu3 %v567_v0  ;;  %v568_v5 = vsub.f32 %v566_v2, %v567_v0 }
  0xd8   :  { %v569_v9 = vand.u32 4294901760, %v568_v5 }
  0xda   :  { %570 = vmatmul.f32.gmra.mxu0 %v569_v9  ;;  %793 = vmatmul.f32.vlgmr.msra.gmra.mxu1 %v557_v50 }
  0xe2   :  { %760 = vmatmul.f32.vlgmr.msra.gmra.mxu0 %v557_v50  ;;  %797 = vmatmul.f32.gmra.mxu1 %v565_v62 }
  0xea   :  { %764 = vmatmul.f32.gmra.mxu0 %v565_v62 }
 0x147   :  { %v632_v6 = vpop.f32.mrf.mxu1 }
 0x14f   :  { %v563_v7 = vpop.f32.mrf.mxu0  ;;  %v636_v10 = vpop.f32.mrf.mxu1 }
 0x150   :  { %v633_v11 = vadd.f32 %v632_v6, %v563_v7  ;;  %v674_v12 = vpop.f32.mrf.mxu2 }
 0x151   :  { %v710_v4 = vpop.f32.mrf.mxu3 }
 0x152   :  { %v675_v13 = vadd.f32 %v674_v12, %v633_v11 }
 0x154   :  { %v711_v14 = vadd.f32 %v710_v4, %v675_v13 }
 0x157   :  { %v571_v63 = vpop.f32.mrf.mxu0  ;;  %v794_v17 = vpop.f32.mrf.mxu1 }
 0x158   :  { %v637_v16 = vadd.f32 %v636_v10, %v571_v63  ;;  %v679_v19 = vpop.f32.mrf.mxu2 }
 0x159   :  { %v716_v23 = vpop.f32.mrf.mxu3 }
 0x15a   :  { %v680_v20 = vadd.f32 %v679_v19, %v637_v16 }
 0x15c   :  { %v717_v24 = vadd.f32 %v716_v23, %v680_v20 }
 0x15f   :  { %v761_v18 = vpop.f32.mrf.mxu0  ;;  %v798_v27 = vpop.f32.mrf.mxu1 }
 0x160   :  { %v762_v8 = vadd.f32 %v761_v18, %v711_v14 }
 0x162   :  { %v795_v21 = vadd.f32 %v794_v17, %v762_v8 }
 0x164   :  { %v801_v22 = vadd.f32 %v795_v21, %v516_v15 }
 0x166   :  { %803 = vst.msk [vmem:[#allocation2] sm:$0xff] %vm22_vm0, %v801_v22 }
 0x167   :  { %v765_v25 = vpop.f32.mrf.mxu0 }
 0x168   :  { %v766_v26 = vadd.f32 %v765_v25, %v717_v24 }
 0x16a   :  { %v799_v29 = vadd.f32 %v798_v27, %v766_v26 }
 0x16c   :  { %v802_v30 = vadd.f32 %v799_v29, %v517_v28 }
 0x16d   :  { %v808_v31 = vld [vmem:[#allocation2] sm:$0xff] }
 0x16e   :  { %804 = vst.msk [vmem:[#allocation2 + $0x8] sm:$0xff] %vm22_vm0, %v802_v30 }
 0x16f   :  { %810 = vst.msk [vmem:[#allocation3] sm:$0xff] %vm22_vm0, %v808_v31 }
 0x175   :  { %v809_v32 = vld [vmem:[#allocation2 + $0x8] sm:$0xff] }
 0x176   :  { %811 = vst.msk [vmem:[#allocation3 + $0x8] sm:$0xff] %vm22_vm0, %v809_v32 }
 0x177   :  { %824 = dma.vmem_to_hbm [thread:$0]  %s817_s22, 256, %s819_s25, [#allocation4], %s880_s26, %s880_s26, %s881_s0  }
 0x178   :  { %876 = dma.done.wait [#allocation4], 256  }
 0x179   :  { %877 = vsyncadd [#allocation4], 4294967040 }
 0x17a   :  { %829 = vsyncpa [#allocation4], 1 }

</bundles_post_ra>
